<compile_context>
chip_gen: v7x
topology: tpu7x:2x2x1
jax: 0.10.0
libtpu: 0.0.40
codegen_flags: <defaults>
</compile_context>

<pallas_src>
import functools

import jax
import jax.numpy as jnp
from jax import lax
from jax.experimental import pallas as pl
from jax.experimental.pallas import tpu as pltpu

LANES = 128                               # hardware lane width
_MIN_SUBLANES = {4: 8, 2: 16, 1: 32}      # sublane multiple per itemsize (f32/bf16/i8)


def _round_up(x, m):
    return (x + m - 1) // m * m


def _device_kind():
    try:
        return jax.devices()[0].device_kind.lower()
    except Exception:  # pragma: no cover - defensive
        return ""


def _penalized_loss_kernel(logits_ref, targets_ref, out_ref, *,
                           pw_minus_1, fp_mult, steps, nb, rem_last,
                           full_last, has_oob_blocks):
    c = pl.program_id(0)          # core split (CORE_PARALLEL on v7x)
    i = pl.program_id(1)          # reduction steps within a core's row range
    tile_rows, lanes = logits_ref.shape

    # Zero the per-core resident (8, 128) accumulator once per core.
    @pl.when(i == 0)
    def _init():
        out_ref[...] = jnp.zeros_like(out_ref)

    # Inputs travel HBM->VMEM in their native dtype; cast on the VPU.
    x = logits_ref[...].astype(jnp.float32)
    t = targets_ref[...].astype(jnp.float32)

    # Numerically stable BCE-with-logits with pos_weight:
    #   loss = (1 - t) * x + (1 + (pw - 1) * t) * softplus(-x)
    # softplus(-x) = max(-x, 0) + log1p(exp(-|x|))
    softplus_neg_x = jnp.maximum(-x, 0.0) + jnp.log1p(jnp.exp(-jnp.abs(x)))
    bce = (1.0 - t) * x + (1.0 + pw_minus_1 * t) * softplus_neg_x

    # preds = sigmoid(x) > 0.5  <=>  x > 0 ; false positive: pred==1 & target==0.
    loss = bce * jnp.where(jnp.logical_and(x > 0.0, t == 0.0), fp_mult, 1.0)

    def _accumulate(v):
        # Fold (tile_rows, 128) -> (8, 128) with pure VPU adds; the single
        # cross-lane reduce happens in the JAX epilogue.
        out_ref[...] += jnp.sum(v.reshape(tile_rows // 8, 8, lanes), axis=0)

    b = c * steps + i             # logical row-block index

    if full_last and not has_oob_blocks:
        # Common case (element count is an exact multiple of the tile):
        # every step is a plain unmasked accumulate — no iota, no branch.
        _accumulate(loss)
    elif full_last:
        # Only duplicate (clamped) trailing blocks must be skipped.
        @pl.when(b < nb)
        def _acc():
            _accumulate(loss)
    else:
        @pl.when(b < nb - 1)
        def _acc_full():
            _accumulate(loss)

        # Only the final row-block can contain padding / out-of-range rows;
        # pay for the iota + compare + select there alone.  rem_last is a
        # static Python int and the local index stays far below int32 range.
        @pl.when(b == nb - 1)
        def _acc_masked():
            r = lax.broadcasted_iota(jnp.int32, (tile_rows, lanes), 0)
            col = lax.broadcasted_iota(jnp.int32, (tile_rows, lanes), 1)
            valid = (r * lanes + col) < rem_last
            _accumulate(jnp.where(valid, loss, 0.0))


def penalized_loss(logits, targets, pos_weight, fp_penalty=2.0, *,
                   max_tile_rows=None, num_cores=None, core_parallel=None):
    """Mean of pos_weighted BCE-with-logits with false positives up-weighted by
    (1 + fp_penalty).  Mirrors the PyTorch PenalizedLoss.forward().

    Inputs may be any shape/float dtype; they are consumed in native dtype
    (callers with hard 0/1 labels can pass bf16/int8 targets to cut DMA bytes)
    and cast to f32 inside the kernel.
    """
    assert logits.shape == targets.shape
    n_total = int(logits.size)
    assert n_total > 0

    kind = _device_kind()
    is_v7 = ("v7" in kind) or ("7x" in kind)
    if max_tile_rows is None:
        # 8192 rows (4 MiB f32 per input buffer) on v7x to amortize the
        # ~0.35us per-step overhead against 3.2 TB/s HBM; 4096 elsewhere so the
        # double-buffered working set stays well inside v5e's 16 MiB scoped VMEM.
        max_tile_rows = 8192 if is_v7 else 4096
    if num_cores is None:
        num_cores = 2 if is_v7 else 1          # only v7x has 2 TensorCores
    if core_parallel is None:
        core_parallel = is_v7 and num_cores > 1

    # Sublane multiple follows the narrowest input dtype packing.
    sub = max(_MIN_SUBLANES.get(jnp.dtype(logits.dtype).itemsize, 8),
              _MIN_SUBLANES.get(jnp.dtype(targets.dtype).itemsize, 8))

    rows = pl.cdiv(n_total, LANES)
    per_core = pl.cdiv(rows, max(num_cores, 1))
    tile_rows = min(_round_up(max_tile_rows, sub), _round_up(per_core, sub))
    if tile_rows > rows:
        # Keep the block within the array: largest sublane-multiple <= rows,
        # except for tiny inputs (rows < sub) where a few rows of pad are free.
        tile_rows = (rows // sub) * sub if rows >= sub else sub
    rows_p = max(rows, tile_rows)

    nb = pl.cdiv(rows_p, tile_rows)            # total row-blocks (last may be partial)
    if nb < num_cores:
        num_cores, core_parallel = 1, False
    steps = pl.cdiv(nb, num_cores)
    has_oob_blocks = num_cores * steps != nb   # at most num_cores-1 duplicate blocks
    rem_last = n_total - (nb - 1) * tile_rows * LANES   # valid elems in final block
    full_last = rem_last == tile_rows * LANES

    flat_x = logits.reshape(-1)                # free (bitcast) reshapes
    flat_t = targets.reshape(-1)
    pad_elems = rows_p * LANES - n_total       # < 128 except for rows<8 inputs
    if pad_elems:
        # TODO(synk): for huge ragged inputs even this sub-row pad is an O(N)
        # XLA copy; avoiding it entirely needs manual DMA on a pl.ANY ref.
        flat_x = jnp.pad(flat_x, (0, pad_elems))
        flat_t = jnp.pad(flat_t, (0, pad_elems))
    x2 = flat_x.reshape(rows_p, LANES)         # native dtype; cast happens in-kernel
    t2 = flat_t.reshape(rows_p, LANES)

    if has_oob_blocks:
        # Clamp duplicate trailing block(s) of the last core onto the final
        # valid block; the kernel skips their accumulation.
        def row_map(c, i):
            return (jnp.minimum(c * steps + i, nb - 1), 0)
    else:
        def row_map(c, i):
            return (c * steps + i, 0)

    kernel = functools.partial(
        _penalized_loss_kernel,
        pw_minus_1=float(pos_weight) - 1.0,    # pos_weight fixed at module init
        fp_mult=1.0 + float(fp_penalty),
        steps=steps, nb=nb, rem_last=rem_last,
        full_last=full_last, has_oob_blocks=has_oob_blocks)

    arb = getattr(pltpu, "ARBITRARY", "arbitrary")
    core_par = getattr(pltpu, "CORE_PARALLEL", None)
    if core_parallel and core_par is not None and num_cores > 1:
        dim_sem = (core_par, arb)              # shard row ranges across v7x's 2 TCs
    else:
        dim_sem = (arb, arb)

    bytes_in = x2.size * x2.dtype.itemsize + t2.size * t2.dtype.itemsize
    cost = pl.CostEstimate(
        flops=10 * n_total,
        transcendentals=2 * n_total,           # exp + log1p per element
        bytes_accessed=bytes_in + num_cores * 8 * LANES * 4)

    # VMEM budget: 2 inputs x 2 pipeline buffers x (tile_rows, 128) f32-or-less
    # = 8 MiB at 4096 rows / 16 MiB at 8192 rows — under every generation's
    # default scoped VMEM (v5e 16 MiB uses the 4096-row tile).
    partials = pl.pallas_call(
        kernel,
        out_shape=jax.ShapeDtypeStruct((num_cores * 8, LANES), jnp.float32),
        grid=(num_cores, steps),
        in_specs=[pl.BlockSpec((tile_rows, LANES), row_map),
                  pl.BlockSpec((tile_rows, LANES), row_map)],
        out_specs=pl.BlockSpec((8, LANES), lambda c, i: (c, 0)),
        compiler_params=pltpu.CompilerParams(dimension_semantics=dim_sem),
        cost_estimate=cost,
    )(x2, t2)

    # Single cross-lane reduce + mean over the true element count.
    return jnp.sum(partials) / n_total


def _reference(logits, targets, pos_weight, fp_penalty=2.0):
    """Pure-JAX reference mirroring the PyTorch module."""
    x = logits.astype(jnp.float32)
    t = targets.astype(jnp.float32)
    sp_neg_x = jnp.maximum(-x, 0.0) + jnp.log1p(jnp.exp(-jnp.abs(x)))
    bce = (1.0 - t) * x + (1.0 + (pos_weight - 1.0) * t) * sp_neg_x
    probs = jax.nn.sigmoid(x)
    preds = (probs > 0.5).astype(jnp.float32)
    fp_mask = jnp.logical_and(preds == 1.0, t == 0.0).astype(jnp.float32)
    return jnp.mean(bce * (1.0 + fp_penalty * fp_mask))


if __name__ == "__main__":
    key = jax.random.PRNGKey(0)
    ks = jax.random.split(key, 12)

    pos_weight = 5.0     # pos_weight from __init__ (deterministic)
    fp_penalty = 2.0     # false_positive_penalty default

    def _check(logits, targets, **kw):
        out = jax.block_until_ready(
            penalized_loss(logits, targets, pos_weight, fp_penalty, **kw))
        ref = _reference(logits, targets, pos_weight, fp_penalty)
        assert jnp.allclose(out, ref, rtol=1e-5, atol=1e-6), (kw, out, ref)

    # 1) Exact multiple of the (rows, 128) layout: zero-copy, unmasked fast path.
    logits1 = jax.random.normal(ks[0], (2048,), dtype=jnp.float32) * 3.0
    targets1 = (jax.random.uniform(ks[1], (2048,)) < 0.1).astype(jnp.float32)
    _check(logits1, targets1)

    # 2) Ragged size: sub-128 tail pad + masked final block.
    logits2 = jax.random.normal(ks[2], (1000,), dtype=jnp.float32) * 3.0
    targets2 = (jax.random.uniform(ks[3], (1000,)) < 0.1).astype(jnp.float32)
    _check(logits2, targets2)

    # 3) Tiny tiles force a multi-step grid with a partial boundary block
    #    (exercises the masked-last-block path + unmasked interior blocks).
    logits3 = jax.random.normal(ks[4], (2103,), dtype=jnp.float32) * 3.0
    targets3 = (jax.random.uniform(ks[5], (2103,)) < 0.1).astype(jnp.float32)
    _check(logits3, targets3, max_tile_rows=8)

    # 4) Two-way block split (serial semantics here) with an odd block count,
    #    exercising the clamped duplicate-block skip used for the v7x core split.
    _check(logits3, targets3, max_tile_rows=8, num_cores=2, core_parallel=False)

    # 5) bf16 inputs: native-dtype DMA with in-kernel cast.
    logits5 = (jax.random.normal(ks[6], (2048,), dtype=jnp.float32) * 3.0
               ).astype(jnp.bfloat16)
    targets5 = (jax.random.uniform(ks[7], (2048,)) < 0.1).astype(jnp.bfloat16)
    _check(logits5, targets5)

    # 6) Small multi-dim ragged input (rows < 8): tiny-input row padding path.
    logits6 = jax.random.normal(ks[8], (2, 4, 97), dtype=jnp.float32) * 3.0
    targets6 = (jax.random.uniform(ks[9], (2, 4, 97)) < 0.1).astype(jnp.float32)
    _check(logits6, targets6)

    print("KERNEL_OK")
</pallas_src>

<mosaic_0001>
module attributes {stable_mosaic.version = 11 : i64} {
  func.func @_penalized_loss_kernel(%arg0: i32, %arg1: i32, %arg2: memref<16x128xf32, #tpu.memory_space<vmem>>, %arg3: memref<16x128xf32, #tpu.memory_space<vmem>>, %arg4: memref<8x128xf32, #tpu.memory_space<vmem>>) attributes {dimension_semantics = [#tpu.dimension_semantics<arbitrary>, #tpu.dimension_semantics<arbitrary>], iteration_bounds = array<i64: 1, 1>, scalar_prefetch = 0 : i64, scratch_operands = 0 : i64, tpu.core_type = #tpu.core_type<tc>, window_params = [{transform_indices = @transform_0, window_bounds = array<i64: 16, 128>}, {transform_indices = @transform_1, window_bounds = array<i64: 16, 128>}, {transform_indices = @transform_2, window_bounds = array<i64: 8, 128>}]} {
    %c0_i32 = arith.constant 0 : i32
    %0 = arith.cmpi eq, %arg1, %c0_i32 : i32
    %1 = arith.extui %0 : i1 to i32
    %c0_i32_0 = arith.constant 0 : i32
    %2 = arith.cmpi ne, %1, %c0_i32_0 : i32
    scf.if %2 {
      %cst_18 = arith.constant 0.000000e+00 : f32
      %38 = vector.broadcast %cst_18 : f32 to vector<8x128xf32>
      %c0_19 = arith.constant 0 : index
      %c0_20 = arith.constant 0 : index
      %39 = vector.load %arg4[%c0_19, %c0_20] : memref<8x128xf32, #tpu.memory_space<vmem>>, vector<8x128xf32>
      tpu.vector_store %arg4[%c0_19, %c0_20], %38 {strides = array<i32>} : memref<8x128xf32, #tpu.memory_space<vmem>>, vector<8x128xf32>,
    } else {
    }
    %c0 = arith.constant 0 : index
    %c0_1 = arith.constant 0 : index
    %3 = vector.load %arg2[%c0, %c0_1] : memref<16x128xf32, #tpu.memory_space<vmem>>, vector<16x128xf32>
    %c0_2 = arith.constant 0 : index
    %c0_3 = arith.constant 0 : index
    %4 = vector.load %arg3[%c0_2, %c0_3] : memref<16x128xf32, #tpu.memory_space<vmem>>, vector<16x128xf32>
    %cst = arith.constant 0.000000e+00 : f32
    %5 = vector.broadcast %cst : f32 to vector<16x128xf32>
    %6 = arith.subf %5, %3 : vector<16x128xf32>
    %cst_4 = arith.constant 0.000000e+00 : f32
    %7 = vector.broadcast %cst_4 : f32 to vector<16x128xf32>
    %8 = arith.maximumf %6, %7 : vector<16x128xf32>
    %9 = math.absf %3 : vector<16x128xf32>
    %cst_5 = arith.constant 0.000000e+00 : f32
    %10 = vector.broadcast %cst_5 : f32 to vector<16x128xf32>
    %11 = arith.subf %10, %9 : vector<16x128xf32>
    %12 = math.exp %11 : vector<16x128xf32>
    %13 = math.log1p %12 : vector<16x128xf32>
    %14 = arith.addf %8, %13 : vector<16x128xf32>
    %cst_6 = arith.constant 1.000000e+00 : f32
    %15 = vector.broadcast %cst_6 : f32 to vector<16x128xf32>
    %16 = arith.subf %15, %4 : vector<16x128xf32>
    %17 = arith.mulf %16, %3 : vector<16x128xf32>
    %cst_7 = arith.constant 4.000000e+00 : f32
    %18 = vector.broadcast %cst_7 : f32 to vector<16x128xf32>
    %19 = arith.mulf %18, %4 : vector<16x128xf32>
    %cst_8 = arith.constant 1.000000e+00 : f32
    %20 = vector.broadcast %cst_8 : f32 to vector<16x128xf32>
    %21 = arith.addf %20, %19 : vector<16x128xf32>
    %22 = arith.mulf %21, %14 : vector<16x128xf32>
    %23 = arith.addf %17, %22 : vector<16x128xf32>
    %cst_9 = arith.constant 0.000000e+00 : f32
    %24 = vector.broadcast %cst_9 : f32 to vector<16x128xf32>
    %25 = arith.cmpf ogt, %3, %24 : vector<16x128xf32>
    %cst_10 = arith.constant 0.000000e+00 : f32
    %26 = vector.broadcast %cst_10 : f32 to vector<16x128xf32>
    %27 = arith.cmpf oeq, %4, %26 : vector<16x128xf32>
    %28 = arith.andi %25, %27 : vector<16x128xi1>
    %cst_11 = arith.constant 3.000000e+00 : f32
    %cst_12 = arith.constant 1.000000e+00 : f32
    %29 = vector.broadcast %cst_11 : f32 to vector<16x128xf32>
    %30 = vector.broadcast %cst_12 : f32 to vector<16x128xf32>
    %31 = arith.select %28, %29, %30 : vector<16x128xi1>, vector<16x128xf32>
    %32 = arith.mulf %23, %31 : vector<16x128xf32>
    %c0_13 = arith.constant 0 : index
    %c0_14 = arith.constant 0 : index
    %33 = vector.load %arg4[%c0_13, %c0_14] : memref<8x128xf32, #tpu.memory_space<vmem>>, vector<8x128xf32>
    %34 = vector.shape_cast %32 : vector<16x128xf32> to vector<2x8x128xf32>
    %cst_15 = arith.constant dense<0.000000e+00> : vector<8x128xf32>
    %35 = vector.multi_reduction <add>, %34, %cst_15 [0] : vector<2x8x128xf32> to vector<8x128xf32>
    %36 = arith.addf %33, %35 : vector<8x128xf32>
    %c0_16 = arith.constant 0 : index
    %c0_17 = arith.constant 0 : index
    %37 = vector.load %arg4[%c0_16, %c0_17] : memref<8x128xf32, #tpu.memory_space<vmem>>, vector<8x128xf32>
    tpu.vector_store %arg4[%c0_16, %c0_17], %36 {strides = array<i32>} : memref<8x128xf32, #tpu.memory_space<vmem>>, vector<8x128xf32>,
    return
  }
  func.func @transform_0(%arg0: i32, %arg1: i32) -> (i32, i32) {
    %c1_i32 = arith.constant 1 : i32
    %0 = arith.muli %arg0, %c1_i32 : i32
    %1 = arith.addi %0, %arg1 : i32
    %c0_i32 = arith.constant 0 : i32
    %c0_i32_0 = arith.constant 0 : i32
    return %1, %c0_i32 : i32, i32
  }
  func.func @transform_1(%arg0: i32, %arg1: i32) -> (i32, i32) {
    %c1_i32 = arith.constant 1 : i32
    %0 = arith.muli %arg0, %c1_i32 : i32
    %1 = arith.addi %0, %arg1 : i32
    %c0_i32 = arith.constant 0 : i32
    %c0_i32_0 = arith.constant 0 : i32
    return %1, %c0_i32 : i32, i32
  }
  func.func @transform_2(%arg0: i32, %arg1: i32) -> (i32, i32) {
    %c0_i32 = arith.constant 0 : i32
    %c0_i32_0 = arith.constant 0 : i32
    return %arg0, %c0_i32 : i32, i32
  }
}

</mosaic_0001>

<bundles_post_ra>
// kernel: tpu_custom_call.1
= control target key start
LH: loop header
LB: loop body
LE: loop exit
PB: predicated region body
PF: predicated region fallthrough
CT: control target
= control target key end

     0   :  { %7 = vsyncpa [#allocation3], 0  ;;  %s279_s0 = inlined_call_operand.hbm [shape: f32[16,128], index: 0, kind: input, shape index: {}]   ;;  %s280_s1 = inlined_call_operand.hbm [shape: f32[16,128], index: 1, kind: input, shape index: {}]   ;;  %s281_s2 = inlined_call_operand.hbm [shape: f32[8,128], index: 2, kind: output, shape index: {}]  }
   0x1   :  { %8 = vsyncpa [#allocation6], 0 }
   0x2   :  { %9 = vsyncpa [#allocation4], 0  ;;  %s222_s9 = smov [#allocation2]   ;;  %s150_s13 = scalar_lea.hbm %s279_s0, 256 }
   0x3   :  { %s19_s10 = sshll.u32 %s222_s9, 4  ;;  %p151_p0 = scmp.ne.s32.totalorder %s279_s0, %s150_s13  ;;  %s20_s10 = int_to_ptr.vmem [resolvable:$true] %s19_s10 }
   0x4   :  { %p154_p1 = scmp.lt.u32.totalorder %s150_s13, %s279_s0 }
   0x6   :  { %p156_p2 = pnand %p154_p1, %p151_p0 }
   0x8   :  { %159 = shalt.err (!%p156_p2)
}
   0x9   :  { %s160_s18 = scalar_lea.vmem %s20_s10, 256  ;;  %p165_p4 = scmp.lt.s32.totalorder %s20_s10, %s20_s10 }
   0xa   :  { %p161_p3 = scmp.ne.s32.totalorder %s20_s10, %s160_s18  ;;  %p166_p5 = scmp.lt.s32.totalorder %s160_s18, %s160_s18 }
   0xc   :  { %p167_p6 = por %p166_p5, %p165_p4 }
   0xe   :  { %p168_p7 = pnand %p167_p6, %p161_p3 }
  0x10   :  { %171 = shalt.err (!%p168_p7)
}
  0x11   :  { %s223_s19 = smov 128   ;;  %s224_s20 = smov 8  }
  0x12   :  { %25 = dma.hbm_to_vmem [thread:$0]  %s279_s0, 256, %s20_s10, [#allocation3], %s223_s19, %s223_s19, %s224_s20  }
  0x13   :  { %s225_s23 = smov [#allocation5]   ;;  %s172_s27 = scalar_lea.hbm %s280_s1, 256 }
  0x14   :  { %s35_s24 = sshll.u32 %s225_s23, 4  ;;  %p173_p8 = scmp.ne.s32.totalorder %s280_s1, %s172_s27  ;;  %s36_s24 = int_to_ptr.vmem [resolvable:$true] %s35_s24 }
  0x15   :  { %p176_p9 = scmp.lt.u32.totalorder %s172_s27, %s280_s1 }
  0x17   :  { %p178_p10 = pnand %p176_p9, %p173_p8 }
  0x19   :  { %181 = shalt.err (!%p178_p10)
}
  0x1a   :  { %s182_s4 = scalar_lea.vmem %s36_s24, 256  ;;  %p187_p12 = scmp.lt.s32.totalorder %s36_s24, %s36_s24 }
  0x1b   :  { %p183_p11 = scmp.ne.s32.totalorder %s36_s24, %s182_s4  ;;  %p188_p13 = scmp.lt.s32.totalorder %s182_s4, %s182_s4 }
  0x1d   :  { %p189_p0 = por %p188_p13, %p187_p12 }
  0x1f   :  { %p190_p1 = pnand %p189_p0, %p183_p11 }
  0x21   :  { %193 = shalt.err (!%p190_p1)
}
  0x22   :  { %41 = dma.hbm_to_vmem [thread:$0]  %s280_s1, 256, %s36_s24, [#allocation6], %s223_s19, %s223_s19, %s224_s20  }
  0x23   :  { %216 = dma.done.wait [#allocation3], 256  }
  0x24   :  { %217 = vsyncadd [#allocation3], 4294967040 }
  0x25   :  { %218 = dma.done.wait [#allocation6], 256  }
  0x26   :  { %219 = vsyncadd [#allocation6], 4294967040  ;;  %v57_v0 = vld [vmem:[#allocation2] sm:$0xff]  ;;  %v58_v1 = vld [vmem:[#allocation2 + $0x8] sm:$0xff]  ;;  %v226_v44 = vmov 1.0   ;;  %s227_s1 = smov [#allocation7]  }
  0x27   :  { %v65_v2 = vand.u32 2147483647, %v57_v0  ;;  %v66_v3 = vand.u32 2147483647, %v58_v1  ;;  %v59_v14 = vld [vmem:[#allocation5] sm:$0xff]  ;;  %v60_v16 = vld [vmem:[#allocation5 + $0x8] sm:$0xff] }
  0x28   :  { %v61_v17 = vsub.f32 0.0, %v57_v0  ;;  %v62_v18 = vsub.f32 0.0, %v58_v1  ;;  %v97_v22 = vmul.f32 4.0, %v59_v14  ;;  %v93_v24 = vsub.f32 1.0, %v59_v14  ;;  %s125_s6 = sshll.u32 %s227_s1, 4  ;;  %s126_s6 = int_to_ptr.vmem [resolvable:$true] %s125_s6 }
  0x29   :  { %v67_v4 = vsub.f32 0.0, %v65_v2  ;;  %v68_v5 = vsub.f32 0.0, %v66_v3  ;;  %v94_v25 = vsub.f32 1.0, %v60_v16  ;;  %v98_v26 = vmul.f32 4.0, %v60_v16  ;;  %s194_s7 = scalar_lea.vmem %s126_s6, 128  ;;  %p199_p3 = scmp.lt.s32.totalorder %s126_s6, %s126_s6 }
  0x2a   :  { %v63_v28 = vmax.f32 %v61_v17, 0.0  ;;  %v64_v29 = vmax.f32 %v62_v18, 0.0  ;;  %vm105_vm2 = vcmp.gt.f32.partialorder %v57_v0, 0.0  ;;  %vm107_vm3 = vcmp.eq.f32.partialorder %v59_v14, 0.0  ;;  %p195_p2 = scmp.ne.s32.totalorder %s126_s6, %s194_s7  ;;  %p200_p4 = scmp.lt.s32.totalorder %s194_s7, %s194_s7 }
  0x2b   :  { %v69_v6 = vmul.f32 1.442695, %v67_v4  ;;  %v71_v7 = vmul.f32 1.442695, %v68_v5  ;;  %v99_v34 = vadd.f32 1.0, %v97_v22  ;;  %vm106_vm4 = vcmp.gt.f32.partialorder %v58_v1, 0.0  ;;  %vm109_vm6 = vmand %vm105_vm2, %vm107_vm3 }
  0x2c   :  { %vm108_vm5 = vcmp.eq.f32.partialorder %v60_v16, 0.0  ;;  %v100_v36 = vadd.f32 1.0, %v98_v26  ;;  %v95_v39 = vmul.f32 %v93_v24, %v57_v0  ;;  %v96_v41 = vmul.f32 %v94_v25, %v58_v1  ;;  %p201_p5 = por %p200_p4, %p199_p3 }
  0x2d   :  { %142 = vpow2.f32 %v69_v6  ;;  %vm110_vm7 = vmand %vm106_vm4, %vm108_vm5  ;;  %v111_v45 = vsel %vm109_vm6, 3.0, %v226_v44 }
  0x2e   :  { %144 = vpow2.f32 %v71_v7  ;;  %v112_v47 = vsel %vm110_vm7, 3.0, %v226_v44  ;;  %p202_p6 = pnand %p201_p5, %p195_p2 }
  0x37   :  { %v143_v8 = vpop.eup %142 }
  0x38   :  { %v145_v9 = vpop.eup %144  ;;  %v73_v10 = vadd.f32 1.0, %v143_v8  ;;  %v76_v12 = vmul.f32 -0.5, %v143_v8  ;;  %v79_v19 = vand.u32 2147483647, %v143_v8 }
  0x39   :  { %v82_v11 = vadd.f32 1.0, %v145_v9  ;;  %v85_v13 = vmul.f32 -0.5, %v145_v9  ;;  %v88_v21 = vand.u32 2147483647, %v145_v9 }
  0x3a   :  { %146 = vlog2.f32 %v73_v10  ;;  %v77_v15 = vadd.f32 1.0, %v76_v12  ;;  %vm80_vm0 = vcmp.lt.f32.partialorder %v79_v19, 0.0004427343 }
  0x3b   :  { %148 = vlog2.f32 %v82_v11  ;;  %v86_v20 = vadd.f32 1.0, %v85_v13  ;;  %vm89_vm1 = vcmp.lt.f32.partialorder %v88_v21, 0.0004427343 }
  0x3c   :  { %v78_v23 = vmul.f32 %v143_v8, %v77_v15 }
  0x3d   :  { %v87_v30 = vmul.f32 %v145_v9, %v86_v20 }
  0x44   :  { %v147_v27 = vpop.eup %146 }
  0x45   :  { %v149_v31 = vpop.eup %148  ;;  %v75_v32 = vmul.f32 0.6931472, %v147_v27 }
  0x46   :  { %v84_v33 = vmul.f32 0.6931472, %v149_v31 }
  0x47   :  { %v81_v35 = vsel %vm80_vm0, %v78_v23, %v75_v32 }
  0x48   :  { %v90_v37 = vsel %vm89_vm1, %v87_v30, %v84_v33  ;;  %v91_v38 = vadd.f32 %v81_v35, %v63_v28 }
  0x49   :  { %v92_v40 = vadd.f32 %v90_v37, %v64_v29 }
  0x4a   :  { %v101_v42 = vmul.f32 %v99_v34, %v91_v38 }
  0x4b   :  { %v102_v43 = vmul.f32 %v100_v36, %v92_v40 }
  0x4c   :  { %v103_v46 = vadd.f32 %v101_v42, %v95_v39 }
  0x4d   :  { %v104_v48 = vadd.f32 %v102_v43, %v96_v41 }
  0x4e   :  { %v113_v49 = vmul.f32 %v111_v45, %v103_v46 }
  0x4f   :  { %v114_v50 = vmul.f32 %v112_v47, %v104_v48 }
  0x51   :  { %v116_v51 = vadd.f32 %v114_v50, %v113_v49 }
  0x53   :  { %118 = vst [vmem:[#allocation7] sm:$0xff] %v116_v51 }
  0x54   :  { %205 = shalt.err (!%p202_p6)
}
  0x55   :  { %s206_s10 = scalar_lea.hbm %s281_s2, 128 }
  0x56   :  { %p207_p7 = scmp.ne.s32.totalorder %s281_s2, %s206_s10  ;;  %p210_p8 = scmp.lt.u32.totalorder %s206_s10, %s281_s2 }
  0x58   :  { %p212_p9 = pnand %p210_p8, %p207_p7 }
  0x5a   :  { %215 = shalt.err (!%p212_p9)
}
  0x5b   :  { %128 = dma.vmem_to_hbm [thread:$0]  %s126_s6, 128, %s281_s2, [#allocation4]  }
  0x5c   :  { %220 = dma.done.wait [#allocation4], 128  }
  0x5d   :  { %221 = vsyncadd [#allocation4], 4294967168 }
  0x5e   :  { %132 = vsyncpa [#allocation3], 1 }
  0x5f   :  { %133 = vsyncpa [#allocation6], 1 }
  0x60   :  { %134 = vsyncpa [#allocation4], 1 }

</bundles_post_ra>
